<compile_context>
chip_gen: v6e
topology: v6e:2x2x1
jax: 0.10.0
libtpu: 0.0.40
codegen_flags: <defaults>
</compile_context>

<pallas_src>
import functools

import jax
import jax.numpy as jnp
from jax import lax
from jax.experimental import pallas as pl
from jax.experimental.pallas import tpu as pltpu


def _cdiv(a, b):
    return (a + b - 1) // b


def _round_up(x, m):
    return ((x + m - 1) // m) * m


def _lane_pad(x):
    return _round_up(max(int(x), 1), 128)


def bigram_kernel(x_ref, table_ref, o_ref, *, sub_l):
    # x_ref:     (8, L) int32 token ids, row-major: local token p = row*L + col
    # table_ref: (V, V) lookup table, VMEM-resident across grid steps
    # o_ref:     (8*L, V) gathered logits rows for this tile
    v = table_ref.shape[0]
    L = x_ref.shape[1]
    n_j = L // sub_l  # lane sub-chunks per token sublane row (static)

    # Vocab-id iota along sublanes, shared by every sub-chunk (hoisted once).
    row_iota = lax.broadcasted_iota(jnp.int32, (v, sub_l), 0)

    for r in range(8):            # static loop over the 8 token sublane rows
        for j in range(n_j):      # static loop over lane sub-chunks
            tok = x_ref[r, pl.ds(j * sub_l, sub_l)]        # (sub_l,) lane-resident ids
            # Transposed one-hot, (V, sub_l): onehot_t[c, p] = (tok[p] == c).
            # NOTE: out-of-range / negative ids yield an all-zero logits row
            # (PyTorch indexing would raise); callers must pass valid ids.
            onehot_t = (row_iota == tok).astype(table_ref.dtype)
            # table[x] == onehot_t^T @ table (contract the vocab/sublane axis).
            out = lax.dot_general(
                onehot_t, table_ref[...],
                dimension_numbers=(((0,), (0,)), ((), ())),
                preferred_element_type=jnp.float32,
            )                                              # (sub_l, V)
            row0 = r * L + j * sub_l                        # static offset
            o_ref[pl.ds(row0, sub_l), :] = out.astype(o_ref.dtype)


def bigram_forward(x, table, *, tm=4096):
    """x: (N, S) integer token ids, table: (V, V) float -> (N, S, V) float."""
    n, s = x.shape
    v = table.shape[0]
    ns = n * s
    itemsize = jnp.dtype(table.dtype).itemsize

    # dtype-dependent sublane multiple of the output block (f32/bf16/int8).
    row_mult = {4: 8, 2: 16, 1: 32}.get(itemsize, 8)
    tile_mult = 8 * row_mult          # keeps L = tm//8 a multiple of row_mult

    # --- Tile-size selection --------------------------------------------------
    # Keep >= ~4 grid steps when possible so dimension_semantics=("parallel",)
    # can shard steps across the two v7x TensorCores; never exceed the
    # (rounded-up) token count; round to the dtype-dependent multiple.
    tm = min(tm, max(_round_up(_cdiv(ns, 4), 256), 256))
    tm = min(tm, _round_up(ns, tile_mult))
    tm = max(tile_mult, _round_up(tm, tile_mult))

    def pick_sub(t):
        L = max(t // 8, 1)
        return 256 if (L >= 256 and L % 256 == 0) else L

    def vmem_bytes(t):
        # Corrected accounting: lane padding of every block + in-kernel temps.
        L = max(t // 8, 1)
        sub = pick_sub(t)
        table_b = _round_up(v, row_mult) * _lane_pad(v) * itemsize   # 1 buffer
        x_b = 2 * 8 * _lane_pad(L) * 4                               # 2 buffers
        out_b = 2 * t * _lane_pad(v) * itemsize                      # 2 buffers
        tmp_b = 4 * _round_up(v, 8) * _lane_pad(sub) * 4             # iota/cmp/one-hot/acc
        return table_b + x_b + out_b + tmp_b

    budget = 40 * 1024 * 1024   # safe under every generation's physical VMEM
    while tm > tile_mult and vmem_bytes(tm) > budget:
        tm = max(tile_mult, _round_up(tm // 2, tile_mult))
    if vmem_bytes(tm) > budget:
        # TODO(synk): for large V, switch to a row-gather design (scalar-prefetched
        # ids + per-row DMA of table rows) instead of the VMEM-resident one-hot matmul.
        raise ValueError("bigram table too large for the VMEM-resident kernel")
    sub_l = pick_sub(tm)
    L = tm // 8

    # --- Pad the flattened token axis; lay ids out lane-dense -----------------
    ns_pad = _round_up(ns, tm)
    num_tiles = ns_pad // tm
    x_flat = x.reshape(ns).astype(jnp.int32)
    if ns_pad != ns:
        x_flat = jnp.pad(x_flat, (0, ns_pad - ns))   # pad with token 0 (valid row)
    # (num_tiles*8, L): compact in HBM/VMEM; a (tm, 1) column would lane-pad 128x.
    x_2d = x_flat.reshape(num_tiles * 8, L)

    est_vmem = vmem_bytes(tm)
    vmem_limit = None
    if est_vmem > 15 * 1024 * 1024:   # above v5e's 16 MiB scoped default
        vmem_limit = min(_round_up(est_vmem + (4 << 20), 1 << 20), 48 << 20)

    cost = pl.CostEstimate(
        flops=2 * ns_pad * v * v,
        transcendentals=0,
        bytes_accessed=ns_pad * 4 + v * v * itemsize + ns_pad * v * itemsize,
    )

    kernel = functools.partial(bigram_kernel, sub_l=sub_l)

    out_flat = pl.pallas_call(
        kernel,
        out_shape=jax.ShapeDtypeStruct((ns_pad, v), table.dtype),
        grid_spec=pltpu.PrefetchScalarGridSpec(
            num_scalar_prefetch=0,
            grid=(num_tiles,),
            in_specs=[
                # Lane-dense token-id tile: block covers rows [8i, 8i+8).
                pl.BlockSpec((8, L), lambda i: (i, 0)),
                # Full table, resident across grid steps: constant index_map
                # (fetched once) + single buffer (no wasted second VMEM copy).
                pl.BlockSpec((v, v), lambda i: (0, 0),
                             pipeline_mode=pl.Buffered(1)),
            ],
            out_specs=pl.BlockSpec((tm, v), lambda i: (i, 0)),
        ),
        compiler_params=pltpu.CompilerParams(
            dimension_semantics=("parallel",),
            vmem_limit_bytes=vmem_limit,
        ),
        cost_estimate=cost,
    )(x_2d, table)

    if ns_pad != ns:
        out_flat = out_flat[:ns]
    return out_flat.reshape(n, s, v)


if __name__ == "__main__":
    key = jax.random.PRNGKey(0)
    k_x, k_w, k_x2 = jax.random.split(key, 3)

    V = 128  # vocab_size

    # NOTE: nn.Parameter(torch.zeros(...)) would make the output trivially
    # zero, so we use a deterministic random table for a meaningful check.
    bigram_table = jax.random.normal(k_w, (V, V), dtype=jnp.float32)

    # Case 1: shapes implied by the module (batch=2, block_size=8).
    N, S = 2, 8
    x = jax.random.randint(k_x, (N, S), 0, V, dtype=jnp.int32)
    y = jax.block_until_ready(bigram_forward(x, bigram_table))
    y_ref = bigram_table[x]
    assert y.shape == (N, S, V)
    assert jnp.allclose(y, y_ref, atol=1e-6), "mismatch vs. reference (case 1)"

    # Case 2: exercises the multi-tile grid and the padding path
    # (N*S = 500 tokens -> padded, multiple grid steps).
    N2, S2 = 5, 100
    x2 = jax.random.randint(k_x2, (N2, S2), 0, V, dtype=jnp.int32)
    y2 = jax.block_until_ready(bigram_forward(x2, bigram_table))
    y2_ref = bigram_table[x2]
    assert y2.shape == (N2, S2, V)
    assert jnp.allclose(y2, y2_ref, atol=1e-6), "mismatch vs. reference (case 2)"

    print("KERNEL_OK")
</pallas_src>

<mosaic_0001>
module attributes {stable_mosaic.version = 11 : i64} {
  func.func @bigram_kernel(%arg0: i32, %arg1: memref<8x8xi32, #tpu.memory_space<vmem>>, %arg2: memref<128x128xf32, #tpu.memory_space<vmem>>, %arg3: memref<64x128xf32, #tpu.memory_space<vmem>>) attributes {dimension_semantics = [#tpu.dimension_semantics<parallel>], iteration_bounds = array<i64: 1>, scalar_prefetch = 0 : i64, scratch_operands = 0 : i64, tpu.core_type = #tpu.core_type<tc>, window_params = [{transform_indices = @transform_0, window_bounds = array<i64: 8, 8>}, {pipeline_mode = #tpu.pipeline_mode<synchronous>, transform_indices = @transform_1, window_bounds = array<i64: 128, 128>}, {transform_indices = @transform_2, window_bounds = array<i64: 64, 128>}]} {
    %0 = tpu.iota {dimensions = array<i32: 0>} : vector<128x8xi32>
    %c0 = arith.constant 0 : index
    %c0_0 = arith.constant 0 : index
    %1 = vector.load %arg1[%c0, %c0_0] : memref<8x8xi32, #tpu.memory_space<vmem>>, vector<1x8xi32>
    %2 = vector.shape_cast %1 : vector<1x8xi32> to vector<8xi32>
    %3 = vector.shape_cast %2 : vector<8xi32> to vector<1x8xi32>
    %4 = vector.broadcast %3 : vector<1x8xi32> to vector<128x8xi32>
    %5 = arith.cmpi eq, %0, %4 : vector<128x8xi32>
    %6 = arith.extui %5 : vector<128x8xi1> to vector<128x8xi32>
    %7 = arith.sitofp %6 : vector<128x8xi32> to vector<128x8xf32>
    %c0_1 = arith.constant 0 : index
    %c0_2 = arith.constant 0 : index
    %8 = vector.load %arg2[%c0_1, %c0_2] : memref<128x128xf32, #tpu.memory_space<vmem>>, vector<128x128xf32>
    %cst = arith.constant dense<0.000000e+00> : vector<8x128xf32>
    %9 = tpu.matmul %7, %8, %cst {dimension_numbers = #tpu.dot_dimension_numbers<[0], [0], [1], [1], [0, 1, 1, 1], [], []>} : vector<128x8xf32>, vector<128x128xf32>, vector<8x128xf32> -> vector<8x128xf32>
    %c0_3 = arith.constant 0 : index
    %c0_4 = arith.constant 0 : index
    %10 = vector.load %arg3[%c0_3, %c0_4] : memref<64x128xf32, #tpu.memory_space<vmem>>, vector<8x128xf32>
    tpu.vector_store %arg3[%c0_3, %c0_4], %9 {strides = array<i32>} : memref<64x128xf32, #tpu.memory_space<vmem>>, vector<8x128xf32>,
    %c1 = arith.constant 1 : index
    %c0_5 = arith.constant 0 : index
    %11 = vector.load %arg1[%c1, %c0_5] : memref<8x8xi32, #tpu.memory_space<vmem>>, vector<1x8xi32>
    %12 = vector.shape_cast %11 : vector<1x8xi32> to vector<8xi32>
    %13 = vector.shape_cast %12 : vector<8xi32> to vector<1x8xi32>
    %14 = vector.broadcast %13 : vector<1x8xi32> to vector<128x8xi32>
    %15 = arith.cmpi eq, %0, %14 : vector<128x8xi32>
    %16 = arith.extui %15 : vector<128x8xi1> to vector<128x8xi32>
    %17 = arith.sitofp %16 : vector<128x8xi32> to vector<128x8xf32>
    %c0_6 = arith.constant 0 : index
    %c0_7 = arith.constant 0 : index
    %18 = vector.load %arg2[%c0_6, %c0_7] : memref<128x128xf32, #tpu.memory_space<vmem>>, vector<128x128xf32>
    %cst_8 = arith.constant dense<0.000000e+00> : vector<8x128xf32>
    %19 = tpu.matmul %17, %18, %cst_8 {dimension_numbers = #tpu.dot_dimension_numbers<[0], [0], [1], [1], [0, 1, 1, 1], [], []>} : vector<128x8xf32>, vector<128x128xf32>, vector<8x128xf32> -> vector<8x128xf32>
    %c8 = arith.constant 8 : index
    %c0_9 = arith.constant 0 : index
    %20 = vector.load %arg3[%c8, %c0_9] : memref<64x128xf32, #tpu.memory_space<vmem>>, vector<8x128xf32>
    tpu.vector_store %arg3[%c8, %c0_9], %19 {strides = array<i32>} : memref<64x128xf32, #tpu.memory_space<vmem>>, vector<8x128xf32>,
    %c2 = arith.constant 2 : index
    %c0_10 = arith.constant 0 : index
    %21 = vector.load %arg1[%c2, %c0_10] : memref<8x8xi32, #tpu.memory_space<vmem>>, vector<1x8xi32>
    %22 = vector.shape_cast %21 : vector<1x8xi32> to vector<8xi32>
    %23 = vector.shape_cast %22 : vector<8xi32> to vector<1x8xi32>
    %24 = vector.broadcast %23 : vector<1x8xi32> to vector<128x8xi32>
    %25 = arith.cmpi eq, %0, %24 : vector<128x8xi32>
    %26 = arith.extui %25 : vector<128x8xi1> to vector<128x8xi32>
    %27 = arith.sitofp %26 : vector<128x8xi32> to vector<128x8xf32>
    %c0_11 = arith.constant 0 : index
    %c0_12 = arith.constant 0 : index
    %28 = vector.load %arg2[%c0_11, %c0_12] : memref<128x128xf32, #tpu.memory_space<vmem>>, vector<128x128xf32>
    %cst_13 = arith.constant dense<0.000000e+00> : vector<8x128xf32>
    %29 = tpu.matmul %27, %28, %cst_13 {dimension_numbers = #tpu.dot_dimension_numbers<[0], [0], [1], [1], [0, 1, 1, 1], [], []>} : vector<128x8xf32>, vector<128x128xf32>, vector<8x128xf32> -> vector<8x128xf32>
    %c16 = arith.constant 16 : index
    %c0_14 = arith.constant 0 : index
    %30 = vector.load %arg3[%c16, %c0_14] : memref<64x128xf32, #tpu.memory_space<vmem>>, vector<8x128xf32>
    tpu.vector_store %arg3[%c16, %c0_14], %29 {strides = array<i32>} : memref<64x128xf32, #tpu.memory_space<vmem>>, vector<8x128xf32>,
    %c3 = arith.constant 3 : index
    %c0_15 = arith.constant 0 : index
    %31 = vector.load %arg1[%c3, %c0_15] : memref<8x8xi32, #tpu.memory_space<vmem>>, vector<1x8xi32>
    %32 = vector.shape_cast %31 : vector<1x8xi32> to vector<8xi32>
    %33 = vector.shape_cast %32 : vector<8xi32> to vector<1x8xi32>
    %34 = vector.broadcast %33 : vector<1x8xi32> to vector<128x8xi32>
    %35 = arith.cmpi eq, %0, %34 : vector<128x8xi32>
    %36 = arith.extui %35 : vector<128x8xi1> to vector<128x8xi32>
    %37 = arith.sitofp %36 : vector<128x8xi32> to vector<128x8xf32>
    %c0_16 = arith.constant 0 : index
    %c0_17 = arith.constant 0 : index
    %38 = vector.load %arg2[%c0_16, %c0_17] : memref<128x128xf32, #tpu.memory_space<vmem>>, vector<128x128xf32>
    %cst_18 = arith.constant dense<0.000000e+00> : vector<8x128xf32>
    %39 = tpu.matmul %37, %38, %cst_18 {dimension_numbers = #tpu.dot_dimension_numbers<[0], [0], [1], [1], [0, 1, 1, 1], [], []>} : vector<128x8xf32>, vector<128x128xf32>, vector<8x128xf32> -> vector<8x128xf32>
    %c24 = arith.constant 24 : index
    %c0_19 = arith.constant 0 : index
    %40 = vector.load %arg3[%c24, %c0_19] : memref<64x128xf32, #tpu.memory_space<vmem>>, vector<8x128xf32>
    tpu.vector_store %arg3[%c24, %c0_19], %39 {strides = array<i32>} : memref<64x128xf32, #tpu.memory_space<vmem>>, vector<8x128xf32>,
    %c4 = arith.constant 4 : index
    %c0_20 = arith.constant 0 : index
    %41 = vector.load %arg1[%c4, %c0_20] : memref<8x8xi32, #tpu.memory_space<vmem>>, vector<1x8xi32>
    %42 = vector.shape_cast %41 : vector<1x8xi32> to vector<8xi32>
    %43 = vector.shape_cast %42 : vector<8xi32> to vector<1x8xi32>
    %44 = vector.broadcast %43 : vector<1x8xi32> to vector<128x8xi32>
    %45 = arith.cmpi eq, %0, %44 : vector<128x8xi32>
    %46 = arith.extui %45 : vector<128x8xi1> to vector<128x8xi32>
    %47 = arith.sitofp %46 : vector<128x8xi32> to vector<128x8xf32>
    %c0_21 = arith.constant 0 : index
    %c0_22 = arith.constant 0 : index
    %48 = vector.load %arg2[%c0_21, %c0_22] : memref<128x128xf32, #tpu.memory_space<vmem>>, vector<128x128xf32>
    %cst_23 = arith.constant dense<0.000000e+00> : vector<8x128xf32>
    %49 = tpu.matmul %47, %48, %cst_23 {dimension_numbers = #tpu.dot_dimension_numbers<[0], [0], [1], [1], [0, 1, 1, 1], [], []>} : vector<128x8xf32>, vector<128x128xf32>, vector<8x128xf32> -> vector<8x128xf32>
    %c32 = arith.constant 32 : index
    %c0_24 = arith.constant 0 : index
    %50 = vector.load %arg3[%c32, %c0_24] : memref<64x128xf32, #tpu.memory_space<vmem>>, vector<8x128xf32>
    tpu.vector_store %arg3[%c32, %c0_24], %49 {strides = array<i32>} : memref<64x128xf32, #tpu.memory_space<vmem>>, vector<8x128xf32>,
    %c5 = arith.constant 5 : index
    %c0_25 = arith.constant 0 : index
    %51 = vector.load %arg1[%c5, %c0_25] : memref<8x8xi32, #tpu.memory_space<vmem>>, vector<1x8xi32>
    %52 = vector.shape_cast %51 : vector<1x8xi32> to vector<8xi32>
    %53 = vector.shape_cast %52 : vector<8xi32> to vector<1x8xi32>
    %54 = vector.broadcast %53 : vector<1x8xi32> to vector<128x8xi32>
    %55 = arith.cmpi eq, %0, %54 : vector<128x8xi32>
    %56 = arith.extui %55 : vector<128x8xi1> to vector<128x8xi32>
    %57 = arith.sitofp %56 : vector<128x8xi32> to vector<128x8xf32>
    %c0_26 = arith.constant 0 : index
    %c0_27 = arith.constant 0 : index
    %58 = vector.load %arg2[%c0_26, %c0_27] : memref<128x128xf32, #tpu.memory_space<vmem>>, vector<128x128xf32>
    %cst_28 = arith.constant dense<0.000000e+00> : vector<8x128xf32>
    %59 = tpu.matmul %57, %58, %cst_28 {dimension_numbers = #tpu.dot_dimension_numbers<[0], [0], [1], [1], [0, 1, 1, 1], [], []>} : vector<128x8xf32>, vector<128x128xf32>, vector<8x128xf32> -> vector<8x128xf32>
    %c40 = arith.constant 40 : index
    %c0_29 = arith.constant 0 : index
    %60 = vector.load %arg3[%c40, %c0_29] : memref<64x128xf32, #tpu.memory_space<vmem>>, vector<8x128xf32>
    tpu.vector_store %arg3[%c40, %c0_29], %59 {strides = array<i32>} : memref<64x128xf32, #tpu.memory_space<vmem>>, vector<8x128xf32>,
    %c6 = arith.constant 6 : index
    %c0_30 = arith.constant 0 : index
    %61 = vector.load %arg1[%c6, %c0_30] : memref<8x8xi32, #tpu.memory_space<vmem>>, vector<1x8xi32>
    %62 = vector.shape_cast %61 : vector<1x8xi32> to vector<8xi32>
    %63 = vector.shape_cast %62 : vector<8xi32> to vector<1x8xi32>
    %64 = vector.broadcast %63 : vector<1x8xi32> to vector<128x8xi32>
    %65 = arith.cmpi eq, %0, %64 : vector<128x8xi32>
    %66 = arith.extui %65 : vector<128x8xi1> to vector<128x8xi32>
    %67 = arith.sitofp %66 : vector<128x8xi32> to vector<128x8xf32>
    %c0_31 = arith.constant 0 : index
    %c0_32 = arith.constant 0 : index
    %68 = vector.load %arg2[%c0_31, %c0_32] : memref<128x128xf32, #tpu.memory_space<vmem>>, vector<128x128xf32>
    %cst_33 = arith.constant dense<0.000000e+00> : vector<8x128xf32>
    %69 = tpu.matmul %67, %68, %cst_33 {dimension_numbers = #tpu.dot_dimension_numbers<[0], [0], [1], [1], [0, 1, 1, 1], [], []>} : vector<128x8xf32>, vector<128x128xf32>, vector<8x128xf32> -> vector<8x128xf32>
    %c48 = arith.constant 48 : index
    %c0_34 = arith.constant 0 : index
    %70 = vector.load %arg3[%c48, %c0_34] : memref<64x128xf32, #tpu.memory_space<vmem>>, vector<8x128xf32>
    tpu.vector_store %arg3[%c48, %c0_34], %69 {strides = array<i32>} : memref<64x128xf32, #tpu.memory_space<vmem>>, vector<8x128xf32>,
    %c7 = arith.constant 7 : index
    %c0_35 = arith.constant 0 : index
    %71 = vector.load %arg1[%c7, %c0_35] : memref<8x8xi32, #tpu.memory_space<vmem>>, vector<1x8xi32>
    %72 = vector.shape_cast %71 : vector<1x8xi32> to vector<8xi32>
    %73 = vector.shape_cast %72 : vector<8xi32> to vector<1x8xi32>
    %74 = vector.broadcast %73 : vector<1x8xi32> to vector<128x8xi32>
    %75 = arith.cmpi eq, %0, %74 : vector<128x8xi32>
    %76 = arith.extui %75 : vector<128x8xi1> to vector<128x8xi32>
    %77 = arith.sitofp %76 : vector<128x8xi32> to vector<128x8xf32>
    %c0_36 = arith.constant 0 : index
    %c0_37 = arith.constant 0 : index
    %78 = vector.load %arg2[%c0_36, %c0_37] : memref<128x128xf32, #tpu.memory_space<vmem>>, vector<128x128xf32>
    %cst_38 = arith.constant dense<0.000000e+00> : vector<8x128xf32>
    %79 = tpu.matmul %77, %78, %cst_38 {dimension_numbers = #tpu.dot_dimension_numbers<[0], [0], [1], [1], [0, 1, 1, 1], [], []>} : vector<128x8xf32>, vector<128x128xf32>, vector<8x128xf32> -> vector<8x128xf32>
    %c56 = arith.constant 56 : index
    %c0_39 = arith.constant 0 : index
    %80 = vector.load %arg3[%c56, %c0_39] : memref<64x128xf32, #tpu.memory_space<vmem>>, vector<8x128xf32>
    tpu.vector_store %arg3[%c56, %c0_39], %79 {strides = array<i32>} : memref<64x128xf32, #tpu.memory_space<vmem>>, vector<8x128xf32>,
    return
  }
  func.func @transform_0(%arg0: i32) -> (i32, i32) {
    %c0_i32 = arith.constant 0 : i32
    %c0_i32_0 = arith.constant 0 : i32
    return %arg0, %c0_i32 : i32, i32
  }
  func.func @transform_1(%arg0: i32) -> (i32, i32) {
    %c0_i32 = arith.constant 0 : i32
    %c0_i32_0 = arith.constant 0 : i32
    %c0_i32_1 = arith.constant 0 : i32
    return %c0_i32, %c0_i32_0 : i32, i32
  }
  func.func @transform_2(%arg0: i32) -> (i32, i32) {
    %c0_i32 = arith.constant 0 : i32
    %c0_i32_0 = arith.constant 0 : i32
    return %arg0, %c0_i32 : i32, i32
  }
}

</mosaic_0001>

<bundles_post_ra>
// kernel: tpu_custom_call.1
= control target key start
LH: loop header
LB: loop body
LE: loop exit
PB: predicated region body
PF: predicated region fallthrough
CT: control target
= control target key end

     0   :  { %7 = vsyncpa [#allocation3], 0  ;;  %s3098_s0 = inlined_call_operand.hbm [shape: s32[8,8], index: 0, kind: input, shape index: {}]   ;;  %s3099_s1 = inlined_call_operand.hbm [shape: f32[128,128], index: 1, kind: input, shape index: {}]   ;;  %s3100_s2 = inlined_call_operand.hbm [shape: f32[64,128], index: 2, kind: output, shape index: {}]  }
   0x1   :  { %8 = vsyncpa [#allocation6], 0 }
   0x2   :  { %9 = vsyncpa [#allocation4], 0  ;;  %s2237_s9 = smov [#allocation2]   ;;  %s2238_s11 = smov [#allocation5]  }
   0x3   :  { %s16_s10 = sshll.u32 %s2237_s9, 4  ;;  %s25_s12 = sshll.u32 %s2238_s11, 4  ;;  %s17_s10 = int_to_ptr.vmem [resolvable:$true] %s16_s10  ;;  %s26_s12 = int_to_ptr.vmem [resolvable:$true] %s25_s12 }
   0x4   :  { %s2179_s13 = scalar_lea.vmem %s17_s10, 128  ;;  %p2184_p1 = scmp.lt.s32.totalorder %s17_s10, %s17_s10 }
   0x5   :  { %p2180_p0 = scmp.ne.s32.totalorder %s17_s10, %s2179_s13  ;;  %p2185_p2 = scmp.lt.s32.totalorder %s2179_s13, %s2179_s13 }
   0x7   :  { %p2186_p3 = por %p2185_p2, %p2184_p1 }
   0x9   :  { %p2187_p4 = pnand %p2186_p3, %p2180_p0 }
   0xb   :  { %2190 = shalt.err (!%p2187_p4)
}
   0xc   :  { %19 = dma.hbm_to_vmem [thread:$0]  %s3098_s0, 128, %s17_s10, [#allocation3]  }
   0xd   :  { %s2199_s16 = scalar_lea.vmem %s26_s12, 2048  ;;  %p2204_p6 = scmp.lt.s32.totalorder %s26_s12, %s26_s12 }
   0xe   :  { %p2200_p5 = scmp.ne.s32.totalorder %s26_s12, %s2199_s16  ;;  %p2205_p7 = scmp.lt.s32.totalorder %s2199_s16, %s2199_s16 }
  0x10   :  { %p2206_p8 = por %p2205_p7, %p2204_p6 }
  0x12   :  { %p2207_p9 = pnand %p2206_p8, %p2200_p5 }
  0x14   :  { %2210 = shalt.err (!%p2207_p9)
}
  0x15   :  { %s2239_s17 = smov 128   ;;  %s2240_s18 = smov 8  }
  0x16   :  { %31 = dma.hbm_to_vmem [thread:$0]  %s3099_s1, 2048, %s26_s12, [#allocation6], %s2239_s17, %s2239_s17, %s2240_s18  }
  0x17   :  { %2231 = dma.done.wait [#allocation3], 128  }
  0x18   :  { %2232 = vsyncadd [#allocation3], 4294967168 }
  0x19   :  { %2233 = dma.done.wait [#allocation6], 2048  }
  0x1a   :  { %2234 = vsyncadd [#allocation6], 4294965248  ;;  %v38_v0 = vlaneseq  ;;  %v2241_v1 = vmov 0.0   ;;  %v2278_v5 = vld [vmem:[#allocation2] ss:$0 sm:$0xff]  ;;  %v2303_v14 = vld [vmem:[#allocation5 + $0x70] sm:$0xff] }
  0x1b   :  { %1721 = vmatprep.subr.mxu0 %v2241_v1  ;;  %1756 = vmatprep.subr.mxu1 %v2241_v1  ;;  %v2280_v6 = vld [vmem:[#allocation2 + $0x1] ss:$0 sm:$0xff]  ;;  %v2308_v16 = vld [vmem:[#allocation5 + $0x68] sm:$0xff]  ;;  %v2321_v20 = vld [vmem:[#allocation2 + $0x2] ss:$0 sm:$0xff]  ;;  %s2243_s0 = smov [#allocation7]  }
  0x1c   :  { %v2270_v2 = vshrl.u32 %v38_v0, 7  ;;  %v2301_v13 = vld [vmem:[#allocation5 + $0x78] sm:$0xff]  ;;  %v2329_v22 = vld [vmem:[#allocation5 + $0x60] sm:$0xff]  ;;  %v2361_v33 = vld [vmem:[#allocation5 + $0x50] sm:$0xff]  ;;  %s1436_s1 = sshll.u32 %s2243_s0, 4  ;;  %s1437_s1 = int_to_ptr.vmem [resolvable:$true] %s1436_s1 }
  0x1d   :  { %1722 = vmatpush3.msra.mxu0 %v2301_v13  ;;  %1757 = vmatpush3.msra.mxu1 %v2301_v13  ;;  %v2325_v21 = vld [vmem:[#allocation2 + $0x3] ss:$0 sm:$0xff]  ;;  %v2384_v39 = vld [vmem:[#allocation5 + $0x48] sm:$0xff]  ;;  %v2407_v45 = vld [vmem:[#allocation5 + $0x40] sm:$0xff]  ;;  %s2211_s21 = scalar_lea.vmem %s1437_s1, 1024  ;;  %p2216_p11 = scmp.lt.s32.totalorder %s1437_s1, %s1437_s1 }
  0x1e   :  { %v2273_v3 = vadd.s32 8, %v2270_v2  ;;  %v2276_v4 = vadd.s32 16, %v2270_v2  ;;  %vm60_vm0 = vcmp.eq.s32.totalorder %v2270_v2, %v2278_v5  ;;  %vm232_vm1 = vcmp.eq.s32.totalorder %v2270_v2, %v2280_v6  ;;  %1723 = vmatprep.subr.mxu0 %v2241_v1  ;;  %1758 = vmatprep.subr.mxu1 %v2241_v1  ;;  %v2341_v27 = vld [vmem:[#allocation5 + $0x58] sm:$0xff]  ;;  %v2446_v56 = vld [vmem:[#allocation5 + $0x30] sm:$0xff]  ;;  %v2467_v62 = vld [vmem:[#allocation5 + $0x28] sm:$0xff]  ;;  %p2212_p10 = scmp.ne.s32.totalorder %s1437_s1, %s2211_s21  ;;  %p2217_p12 = scmp.lt.s32.totalorder %s2211_s21, %s2211_s21 }
  0x1f   :  { %v1450_v7 = vsel %vm60_vm0, 1.0, %v2241_v1  ;;  %v1467_v8 = vsel %vm232_vm1, 1.0, %v2241_v1  ;;  %v2299_v12 = vadd.s32 24, %v2270_v2  ;;  %1724 = vmatpush3.msra.mxu0 %v2303_v14  ;;  %v2319_v19 = vadd.s32 32, %v2270_v2  ;;  %1759 = vmatpush3.msra.mxu1 %v2303_v14  ;;  %v2426_v51 = vld [vmem:[#allocation5 + $0x38] sm:$0xff] }
  0x20   :  { %vm61_vm2 = vcmp.eq.s32.totalorder %v2273_v3, %v2278_v5  ;;  %vm233_vm3 = vcmp.eq.s32.totalorder %v2273_v3, %v2280_v6  ;;  %v2008_v11 = vpack.i.bf16 %v1467_v8, %v1450_v7  ;;  %vm62_vm4 = vcmp.eq.s32.totalorder %v2276_v4, %v2278_v5  ;;  %1725 = vmatprep.subr.mxu0 %v2241_v1  ;;  %p2218_p13 = por %p2217_p12, %p2216_p11 }
  0x21   :  { %v1451_v9 = vsel %vm61_vm2, 1.0, %v2241_v1  ;;  %v1468_v10 = vsel %vm233_vm3, 1.0, %v2241_v1  ;;  %vm234_vm5 = vcmp.eq.s32.totalorder %v2276_v4, %v2280_v6  ;;  %v1452_v17 = vsel %vm62_vm4, 1.0, %v2241_v1  ;;  %1760 = vmatprep.subr.mxu1 %v2241_v1  ;;  %1726 = vmatpush3.msra.mxu0 %v2308_v16 }
  0x22   :  { %2009 = vxpose.xlu0.b32.start [1/16] (narrow) %v2008_v11, 8  ;;  %v2010_v15 = vpack.i.bf16 %v1468_v10, %v1451_v9  ;;  %v1469_v18 = vsel %vm234_vm5, 1.0, %v2241_v1  ;;  %vm63_vm6 = vcmp.eq.s32.totalorder %v2299_v12, %v2278_v5  ;;  %vm235_vm7 = vcmp.eq.s32.totalorder %v2299_v12, %v2280_v6  ;;  %1761 = vmatpush3.msra.mxu1 %v2308_v16  ;;  %v2486_v10 = vld [vmem:[#allocation5 + $0x20] sm:$0xff]  ;;  %p2219_p0 = pnand %p2218_p13, %p2212_p10 }
  0x23   :  { %v2012_v23 = vpack.i.bf16 %v1469_v18, %v1452_v17  ;;  %v1453_v24 = vsel %vm63_vm6, 1.0, %v2241_v1  ;;  %v1470_v25 = vsel %vm235_vm7, 1.0, %v2241_v1  ;;  %v2335_v26 = vadd.s32 40, %v2270_v2  ;;  %1727 = vmatprep.subr.mxu0 %v2241_v1  ;;  %1762 = vmatprep.subr.mxu1 %v2241_v1 }
  0x24   :  { %vm404_vm8 = vcmp.eq.s32.totalorder %v2270_v2, %v2321_v20  ;;  %vm64_vm9 = vcmp.eq.s32.totalorder %v2319_v19, %v2278_v5  ;;  %vm236_vm10 = vcmp.eq.s32.totalorder %v2319_v19, %v2280_v6  ;;  %vm576_vm11 = vcmp.eq.s32.totalorder %v2270_v2, %v2325_v21  ;;  %1728 = vmatpush3.msra.mxu0 %v2329_v22 }
  0x25   :  { %v1484_v28 = vsel %vm404_vm8, 1.0, %v2241_v1  ;;  %1763 = vmatpush3.msra.mxu1 %v2329_v22  ;;  %v1501_v29 = vsel %vm576_vm11, 1.0, %v2241_v1  ;;  %vm405_vm12 = vcmp.eq.s32.totalorder %v2273_v3, %v2321_v20  ;;  %1729 = vmatprep.subr.mxu0 %v2241_v1  ;;  %v2014_v30 = vpack.i.bf16 %v1470_v25, %v1453_v24 }
  0x26   :  { %2011 = vxpose.xlu0.b32.cont [2/16] (narrow) %v2010_v15, 8  ;;  %1764 = vmatprep.subr.mxu1 %v2241_v1  ;;  %v2045_v31 = vpack.i.bf16 %v1501_v29, %v1484_v28  ;;  %v1485_v32 = vsel %vm405_vm12, 1.0, %v2241_v1  ;;  %vm577_vm13 = vcmp.eq.s32.totalorder %v2273_v3, %v2325_v21  ;;  %v1454_v34 = vsel %vm64_vm9, 1.0, %v2241_v1 }
  0x27   :  { %1730 = vmatpush3.msra.mxu0 %v2341_v27  ;;  %v1471_v35 = vsel %vm236_vm10, 1.0, %v2241_v1  ;;  %vm65_vm14 = vcmp.eq.s32.totalorder %v2335_v26, %v2278_v5  ;;  %v1502_v36 = vsel %vm577_vm13, 1.0, %v2241_v1  ;;  %1765 = vmatpush3.msra.mxu1 %v2341_v27  ;;  %vm237_vm15 = vcmp.eq.s32.totalorder %v2335_v26, %v2280_v6 }
  0x28   :  { %1731 = vmatprep.subr.mxu0 %v2241_v1  ;;  %v2379_v37 = vadd.s32 48, %v2270_v2  ;;  %2046 = vxpose.xlu1.b32.start [1/16] (narrow) %v2045_v31, 8  ;;  %v2047_v38 = vpack.i.bf16 %v1502_v36, %v1485_v32  ;;  %vm406_vm0 = vcmp.eq.s32.totalorder %v2276_v4, %v2321_v20  ;;  %vm578_vm1 = vcmp.eq.s32.totalorder %v2276_v4, %v2325_v21  ;;  %v2527_v31 = vld [vmem:[#allocation5 + $0x10] sm:$0xff] }
  0x29   :  { %1766 = vmatprep.subr.mxu1 %v2241_v1  ;;  %v1486_v40 = vsel %vm406_vm0, 1.0, %v2241_v1  ;;  %1732 = vmatpush3.msra.mxu0 %v2361_v33  ;;  %v2016_v41 = vpack.i.bf16 %v1471_v35, %v1454_v34  ;;  %v1503_v42 = vsel %vm578_vm1, 1.0, %v2241_v1  ;;  %vm407_vm2 = vcmp.eq.s32.totalorder %v2299_v12, %v2321_v20 }
  0x2a   :  { %2013 = vxpose.xlu0.b32.cont [3/16] (narrow) %v2012_v23, 8  ;;  %1767 = vmatpush3.msra.mxu1 %v2361_v33  ;;  %v1455_v43 = vsel %vm65_vm14, 1.0, %v2241_v1  ;;  %v1472_v44 = vsel %vm237_vm15, 1.0, %v2241_v1  ;;  %vm579_vm3 = vcmp.eq.s32.totalorder %v2299_v12, %v2325_v21  ;;  %vm66_vm4 = vcmp.eq.s32.totalorder %v2379_v37, %v2278_v5  ;;  %v2506_v23 = vld [vmem:[#allocation5 + $0x18] sm:$0xff] }
  0x2b   :  { %1733 = vmatprep.subr.mxu0 %v2241_v1  ;;  %1768 = vmatprep.subr.mxu1 %v2241_v1  ;;  %vm238_vm5 = vcmp.eq.s32.totalorder %v2379_v37, %v2280_v6  ;;  %v2414_v46 = vadd.s32 56, %v2270_v2  ;;  %v2049_v47 = vpack.i.bf16 %v1503_v42, %v1486_v40  ;;  %v1487_v48 = vsel %vm407_vm2, 1.0, %v2241_v1  ;;  %v2546_v40 = vld [vmem:[#allocation5 + $0x8] sm:$0xff] }
  0x2c   :  { %1734 = vmatpush3.msra.mxu0 %v2384_v39  ;;  %2048 = vxpose.xlu1.b32.cont [2/16] (narrow) %v2047_v38, 8  ;;  %v1504_v49 = vsel %vm579_vm3, 1.0, %v2241_v1  ;;  %v2018_v50 = vpack.i.bf16 %v1472_v44, %v1455_v43  ;;  %vm408_vm6 = vcmp.eq.s32.totalorder %v2319_v19, %v2321_v20  ;;  %vm580_vm7 = vcmp.eq.s32.totalorder %v2319_v19, %v2325_v21 }
  0x2d   :  { %1769 = vmatpush3.msra.mxu1 %v2384_v39  ;;  %1735 = vmatprep.subr.mxu0 %v2241_v1  ;;  %v1456_v52 = vsel %vm66_vm4, 1.0, %v2241_v1  ;;  %v1473_v53 = vsel %vm238_vm5, 1.0, %v2241_v1  ;;  %vm67_vm8 = vcmp.eq.s32.totalorder %v2414_v46, %v2278_v5  ;;  %vm239_vm9 = vcmp.eq.s32.totalorder %v2414_v46, %v2280_v6 }
  0x2e   :  { %2015 = vxpose.xlu0.b32.cont [4/16] (narrow) %v2014_v30, 8  ;;  %1770 = vmatprep.subr.mxu1 %v2241_v1  ;;  %v2443_v54 = vadd.s32 64, %v2270_v2  ;;  %v2051_v55 = vpack.i.bf16 %v1504_v49, %v1487_v48  ;;  %v1488_v57 = vsel %vm408_vm6, 1.0, %v2241_v1  ;;  %v1505_v58 = vsel %vm580_vm7, 1.0, %v2241_v1 }
  0x2f   :  { %1736 = vmatpush3.msra.mxu0 %v2407_v45  ;;  %1771 = vmatpush3.msra.mxu1 %v2407_v45  ;;  %v2020_v59 = vpack.i.bf16 %v1473_v53, %v1456_v52  ;;  %vm409_vm10 = vcmp.eq.s32.totalorder %v2335_v26, %v2321_v20  ;;  %vm581_vm11 = vcmp.eq.s32.totalorder %v2335_v26, %v2325_v21  ;;  %v1457_v60 = vsel %vm67_vm8, 1.0, %v2241_v1 }
  0x30   :  { %1737 = vmatprep.subr.mxu0 %v2241_v1  ;;  %2050 = vxpose.xlu1.b32.cont [3/16] (narrow) %v2049_v47, 8  ;;  %v1474_v61 = vsel %vm239_vm9, 1.0, %v2241_v1  ;;  %vm68_vm12 = vcmp.eq.s32.totalorder %v2443_v54, %v2278_v5  ;;  %vm240_vm13 = vcmp.eq.s32.totalorder %v2443_v54, %v2280_v6  ;;  %v2474_v63 = vadd.s32 72, %v2270_v2  ;;  %v2566_v47 = vld [vmem:[#allocation5] sm:$0xff] }
  0x31   :  { %1772 = vmatprep.subr.mxu1 %v2241_v1  ;;  %1738 = vmatpush3.msra.mxu0 %v2426_v51  ;;  %v2053_v0 = vpack.i.bf16 %v1505_v58, %v1488_v57  ;;  %v1489_v7 = vsel %vm409_vm10, 1.0, %v2241_v1  ;;  %v1506_v8 = vsel %vm581_vm11, 1.0, %v2241_v1  ;;  %v2022_v9 = vpack.i.bf16 %v1474_v61, %v1457_v60 }
  0x32   :  { %2017 = vxpose.xlu0.b32.cont [5/16] (narrow) %v2016_v41, 8  ;;  %1773 = vmatpush3.msra.mxu1 %v2426_v51  ;;  %vm410_vm14 = vcmp.eq.s32.totalorder %v2379_v37, %v2321_v20  ;;  %vm582_vm15 = vcmp.eq.s32.totalorder %v2379_v37, %v2325_v21  ;;  %v1458_v11 = vsel %vm68_vm12, 1.0, %v2241_v1  ;;  %v1475_v15 = vsel %vm240_vm13, 1.0, %v2241_v1 }
  0x33   :  { %1739 = vmatprep.subr.mxu0 %v2241_v1  ;;  %1774 = vmatprep.subr.mxu1 %v2241_v1  ;;  %vm69_vm0 = vcmp.eq.s32.totalorder %v2474_v63, %v2278_v5  ;;  %vm241_vm1 = vcmp.eq.s32.totalorder %v2474_v63, %v2280_v6  ;;  %v2503_v17 = vadd.s32 80, %v2270_v2  ;;  %v2055_v18 = vpack.i.bf16 %v1506_v8, %v1489_v7 }
  0x34   :  { %1740 = vmatpush3.msra.mxu0 %v2446_v56  ;;  %2052 = vxpose.xlu1.b32.cont [4/16] (narrow) %v2051_v55, 8  ;;  %v1490_v24 = vsel %vm410_vm14, 1.0, %v2241_v1  ;;  %v1507_v25 = vsel %vm582_vm15, 1.0, %v2241_v1  ;;  %v2024_v28 = vpack.i.bf16 %v1475_v15, %v1458_v11  ;;  %vm411_vm2 = vcmp.eq.s32.totalorder %v2414_v46, %v2321_v20 }
  0x35   :  { %1775 = vmatpush3.msra.mxu1 %v2446_v56  ;;  %1741 = vmatprep.subr.mxu0 %v2241_v1  ;;  %vm583_vm3 = vcmp.eq.s32.totalorder %v2414_v46, %v2325_v21  ;;  %v1459_v29 = vsel %vm69_vm0, 1.0, %v2241_v1  ;;  %v1476_v30 = vsel %vm241_vm1, 1.0, %v2241_v1  ;;  %vm70_vm4 = vcmp.eq.s32.totalorder %v2503_v17, %v2278_v5 }
  0x36   :  { %2019 = vxpose.xlu0.b32.cont [6/16] (narrow) %v2018_v50, 8  ;;  %1776 = vmatprep.subr.mxu1 %v2241_v1  ;;  %vm242_vm5 = vcmp.eq.s32.totalorder %v2503_v17, %v2280_v6  ;;  %v2534_v32 = vadd.s32 88, %v2270_v2  ;;  %v2057_v34 = vpack.i.bf16 %v1507_v25, %v1490_v24  ;;  %v1491_v35 = vsel %vm411_vm2, 1.0, %v2241_v1 }
  0x37   :  { %1742 = vmatpush3.msra.mxu0 %v2467_v62  ;;  %1777 = vmatpush3.msra.mxu1 %v2467_v62  ;;  %v1508_v36 = vsel %vm583_vm3, 1.0, %v2241_v1  ;;  %v2026_v38 = vpack.i.bf16 %v1476_v30, %v1459_v29  ;;  %vm412_vm6 = vcmp.eq.s32.totalorder %v2443_v54, %v2321_v20  ;;  %vm584_vm7 = vcmp.eq.s32.totalorder %v2443_v54, %v2325_v21 }
  0x38   :  { %1743 = vmatprep.subr.mxu0 %v2241_v1  ;;  %2054 = vxpose.xlu1.b32.cont [5/16] (narrow) %v2053_v0, 8  ;;  %v1460_v41 = vsel %vm70_vm4, 1.0, %v2241_v1  ;;  %v1477_v42 = vsel %vm242_vm5, 1.0, %v2241_v1  ;;  %vm71_vm8 = vcmp.eq.s32.totalorder %v2534_v32, %v2278_v5  ;;  %vm243_vm9 = vcmp.eq.s32.totalorder %v2534_v32, %v2280_v6 }
  0x39   :  { %1778 = vmatprep.subr.mxu1 %v2241_v1  ;;  %1744 = vmatpush3.msra.mxu0 %v2486_v10  ;;  %v2563_v43 = vadd.s32 96, %v2270_v2  ;;  %v2059_v44 = vpack.i.bf16 %v1508_v36, %v1491_v35  ;;  %v1492_v48 = vsel %vm412_vm6, 1.0, %v2241_v1  ;;  %v1509_v49 = vsel %vm584_vm7, 1.0, %v2241_v1 }
  0x3a   :  { %2021 = vxpose.xlu0.b32.cont [7/16] (narrow) %v2020_v59, 8  ;;  %1779 = vmatpush3.msra.mxu1 %v2486_v10  ;;  %v2028_v50 = vpack.i.bf16 %v1477_v42, %v1460_v41  ;;  %vm413_vm10 = vcmp.eq.s32.totalorder %v2474_v63, %v2321_v20  ;;  %vm585_vm11 = vcmp.eq.s32.totalorder %v2474_v63, %v2325_v21  ;;  %v1461_v52 = vsel %vm71_vm8, 1.0, %v2241_v1  ;;  %v2639_v41 = vld [vmem:[#allocation2 + $0x4] ss:$0 sm:$0xff]  ;;  %v2641_v42 = vld [vmem:[#allocation2 + $0x5] ss:$0 sm:$0xff] }
  0x3b   :  { %1745 = vmatprep.subr.mxu0 %v2241_v1  ;;  %1780 = vmatprep.subr.mxu1 %v2241_v1  ;;  %v1478_v53 = vsel %vm243_vm9, 1.0, %v2241_v1  ;;  %vm72_vm12 = vcmp.eq.s32.totalorder %v2563_v43, %v2278_v5  ;;  %vm244_vm13 = vcmp.eq.s32.totalorder %v2563_v43, %v2280_v6  ;;  %v2592_v55 = vadd.s32 104, %v2270_v2 }
  0x3c   :  { %1746 = vmatpush3.msra.mxu0 %v2506_v23  ;;  %2056 = vxpose.xlu1.b32.cont [6/16] (narrow) %v2055_v18, 8  ;;  %v2061_v57 = vpack.i.bf16 %v1509_v49, %v1492_v48  ;;  %v1493_v58 = vsel %vm413_vm10, 1.0, %v2241_v1  ;;  %v1510_v59 = vsel %vm585_vm11, 1.0, %v2241_v1  ;;  %v2030_v60 = vpack.i.bf16 %v1478_v53, %v1461_v52 }
  0x3d   :  { %1781 = vmatpush3.msra.mxu1 %v2506_v23  ;;  %1747 = vmatprep.subr.mxu0 %v2241_v1  ;;  %vm414_vm14 = vcmp.eq.s32.totalorder %v2503_v17, %v2321_v20  ;;  %vm586_vm15 = vcmp.eq.s32.totalorder %v2503_v17, %v2325_v21  ;;  %v1462_v61 = vsel %vm72_vm12, 1.0, %v2241_v1  ;;  %v1479_v0 = vsel %vm244_vm13, 1.0, %v2241_v1 }
  0x3e   :  { %2023 = vxpose.xlu0.b32.cont [8/16] (narrow) %v2022_v9, 8  ;;  %1782 = vmatprep.subr.mxu1 %v2241_v1  ;;  %vm73_vm0 = vcmp.eq.s32.totalorder %v2592_v55, %v2278_v5  ;;  %vm245_vm1 = vcmp.eq.s32.totalorder %v2592_v55, %v2280_v6  ;;  %v2610_v7 = vadd.s32 112, %v2270_v2  ;;  %v2063_v8 = vpack.i.bf16 %v1510_v59, %v1493_v58 }
  0x3f   :  { %1748 = vmatpush3.msra.mxu0 %v2527_v31  ;;  %1783 = vmatpush3.msra.mxu1 %v2527_v31  ;;  %v1494_v9 = vsel %vm414_vm14, 1.0, %v2241_v1  ;;  %v1511_v11 = vsel %vm586_vm15, 1.0, %v2241_v1  ;;  %v2032_v15 = vpack.i.bf16 %v1479_v0, %v1462_v61  ;;  %vm415_vm2 = vcmp.eq.s32.totalorder %v2534_v32, %v2321_v20 }
  0x40   :  { %1749 = vmatprep.subr.mxu0 %v2241_v1  ;;  %2058 = vxpose.xlu1.b32.cont [7/16] (narrow) %v2057_v34, 8  ;;  %vm587_vm3 = vcmp.eq.s32.totalorder %v2534_v32, %v2325_v21  ;;  %v1463_v18 = vsel %vm73_vm0, 1.0, %v2241_v1  ;;  %v1480_v24 = vsel %vm245_vm1, 1.0, %v2241_v1  ;;  %vm74_vm4 = vcmp.eq.s32.totalorder %v2610_v7, %v2278_v5 }
  0x41   :  { %1784 = vmatprep.subr.mxu1 %v2241_v1  ;;  %1750 = vmatpush3.msra.mxu0 %v2546_v40  ;;  %vm246_vm5 = vcmp.eq.s32.totalorder %v2610_v7, %v2280_v6  ;;  %v2625_v25 = vadd.s32 120, %v2270_v2  ;;  %v1495_v29 = vsel %vm415_vm2, 1.0, %v2241_v1  ;;  %v1512_v30 = vsel %vm587_vm3, 1.0, %v2241_v1 }
  0x42   :  { %2025 = vxpose.xlu0.b32.cont [9/16] (narrow) %v2024_v28, 8  ;;  %1785 = vmatpush3.msra.mxu1 %v2546_v40  ;;  %v2065_v28 = vpack.i.bf16 %v1511_v11, %v1494_v9  ;;  %v2034_v34 = vpack.i.bf16 %v1480_v24, %v1463_v18  ;;  %vm416_vm6 = vcmp.eq.s32.totalorder %v2563_v43, %v2321_v20  ;;  %v1464_v35 = vsel %vm74_vm4, 1.0, %v2241_v1  ;;  %v2677_v18 = vld [vmem:[#allocation2 + $0x7] ss:$0 sm:$0xff] }
  0x43   :  { %1751 = vmatprep.subr.mxu0 %v2241_v1  ;;  %1786 = vmatprep.subr.mxu1 %v2241_v1  ;;  %vm588_vm7 = vcmp.eq.s32.totalorder %v2563_v43, %v2325_v21  ;;  %v1481_v36 = vsel %vm246_vm5, 1.0, %v2241_v1  ;;  %vm75_vm8 = vcmp.eq.s32.totalorder %v2625_v25, %v2278_v5  ;;  %vm247_vm9 = vcmp.eq.s32.totalorder %v2625_v25, %v2280_v6 }
  0x44   :  { %1752 = vmatpush3.msra.mxu0 %v2566_v47  ;;  %2060 = vxpose.xlu1.b32.cont [8/16] (narrow) %v2059_v44, 8  ;;  %v1496_v44 = vsel %vm416_vm6, 1.0, %v2241_v1  ;;  %v1513_v48 = vsel %vm588_vm7, 1.0, %v2241_v1  ;;  %v2036_v49 = vpack.i.bf16 %v1481_v36, %v1464_v35  ;;  %vm417_vm10 = vcmp.eq.s32.totalorder %v2592_v55, %v2321_v20 }
  0x45   :  { %1787 = vmatpush3.msra.mxu1 %v2566_v47  ;;  %1791 = vmatprep.subr.mxu0 %v2241_v1  ;;  %vm589_vm11 = vcmp.eq.s32.totalorder %v2592_v55, %v2325_v21  ;;  %v1465_v5 = vsel %vm75_vm8, 1.0, %v2241_v1  ;;  %v1482_v6 = vsel %vm247_vm9, 1.0, %v2241_v1  ;;  %vm748_vm12 = vcmp.eq.s32.totalorder %v2270_v2, %v2639_v41 }
  0x46   :  { %2027 = vxpose.xlu0.b32.cont [10/16] (narrow) %v2026_v38, 8  ;;  %1826 = vmatprep.subr.mxu1 %v2241_v1  ;;  %v2067_v38 = vpack.i.bf16 %v1512_v30, %v1495_v29  ;;  %vm920_vm13 = vcmp.eq.s32.totalorder %v2270_v2, %v2641_v42  ;;  %v1497_v52 = vsel %vm417_vm10, 1.0, %v2241_v1  ;;  %v1514_v53 = vsel %vm589_vm11, 1.0, %v2241_v1 }
  0x47   :  { %vm418_vm14 = vcmp.eq.s32.totalorder %v2610_v7, %v2321_v20  ;;  %vm590_vm15 = vcmp.eq.s32.totalorder %v2610_v7, %v2325_v21  ;;  %v1518_v58 = vsel %vm748_vm12, 1.0, %v2241_v1  ;;  %v1535_v59 = vsel %vm920_vm13, 1.0, %v2241_v1 }
  0x48   :  { %2062 = vxpose.xlu1.b32.cont [9/16] (narrow) %v2061_v57, 8  ;;  %v2038_v57 = vpack.i.bf16 %v1482_v6, %v1465_v5  ;;  %vm749_vm0 = vcmp.eq.s32.totalorder %v2273_v3, %v2639_v41  ;;  %vm921_vm1 = vcmp.eq.s32.totalorder %v2273_v3, %v2641_v42  ;;  %v1498_v61 = vsel %vm418_vm14, 1.0, %v2241_v1 }
  0x49   :  { %v1515_v0 = vsel %vm590_vm15, 1.0, %v2241_v1  ;;  %vm419_vm2 = vcmp.eq.s32.totalorder %v2625_v25, %v2321_v20  ;;  %vm591_vm3 = vcmp.eq.s32.totalorder %v2625_v25, %v2325_v21  ;;  %v1519_v9 = vsel %vm749_vm0, 1.0, %v2241_v1 }
  0x4a   :  { %2029 = vxpose.xlu0.b32.cont [11/16] (narrow) %v2028_v50, 8  ;;  %v2069_v50 = vpack.i.bf16 %v1513_v48, %v1496_v44  ;;  %v1536_v11 = vsel %vm921_vm1, 1.0, %v2241_v1  ;;  %vm750_vm4 = vcmp.eq.s32.totalorder %v2276_v4, %v2639_v41  ;;  %vm922_vm5 = vcmp.eq.s32.totalorder %v2276_v4, %v2641_v42 }
  0x4b   :  { %v2073_v24 = vpack.i.bf16 %v1515_v0, %v1498_v61  ;;  %v1499_v20 = vsel %vm419_vm2, 1.0, %v2241_v1  ;;  %v1516_v21 = vsel %vm591_vm3, 1.0, %v2241_v1  ;;  %vm1264_vm7 = vcmp.eq.s32.totalorder %v2270_v2, %v2677_v18 }
  0x4c   :  { %2064 = vxpose.xlu1.b32.cont [10/16] (narrow) %v2063_v8, 8  ;;  %v2082_v8 = vpack.i.bf16 %v1535_v59, %v1518_v58  ;;  %v1520_v29 = vsel %vm750_vm4, 1.0, %v2241_v1  ;;  %v1537_v30 = vsel %vm922_vm5, 1.0, %v2241_v1  ;;  %vm751_vm8 = vcmp.eq.s32.totalorder %v2299_v12, %v2639_v41 }
  0x4d   :  { %vm923_vm9 = vcmp.eq.s32.totalorder %v2299_v12, %v2641_v42  ;;  %vm752_vm10 = vcmp.eq.s32.totalorder %v2319_v19, %v2639_v41  ;;  %vm924_vm11 = vcmp.eq.s32.totalorder %v2319_v19, %v2641_v42  ;;  %v1569_v35 = vsel %vm1264_vm7, 1.0, %v2241_v1 }
  0x4e   :  { %2031 = vxpose.xlu0.b32.cont [12/16] (narrow) %v2030_v60, 8  ;;  %v2071_v60 = vpack.i.bf16 %v1514_v53, %v1497_v52  ;;  %vm1265_vm13 = vcmp.eq.s32.totalorder %v2273_v3, %v2677_v18  ;;  %vm2242_vm14 = vmmov 0   ;;  %v2086_v36 = vpack.i.bf16 %v1537_v30, %v1520_v29 }
  0x4f   :  { %1753 = vmatprep.mubr.msk.f32.mxu0 %vm2242_vm14, %v2241_v1  ;;  %1788 = vmatprep.mubr.msk.f32.mxu1 %vm2242_vm14, %v2241_v1  ;;  %v1538_v44 = vsel %vm923_vm9, 1.0, %v2241_v1  ;;  %v1522_v48 = vsel %vm752_vm10, 1.0, %v2241_v1  ;;  %v1570_v6 = vsel %vm1265_vm13, 1.0, %v2241_v1  ;;  %vm1266_vm0 = vcmp.eq.s32.totalorder %v2276_v4, %v2677_v18 }
  0x50   :  { %2066 = vxpose.xlu1.b32.cont [11/16] (narrow) %v2065_v28, 8  ;;  %v2084_v28 = vpack.i.bf16 %v1536_v11, %v1519_v9  ;;  %vm753_vm1 = vcmp.eq.s32.totalorder %v2335_v26, %v2639_v41  ;;  %vm925_vm2 = vcmp.eq.s32.totalorder %v2335_v26, %v2641_v42  ;;  %v1571_v58 = vsel %vm1266_vm0, 1.0, %v2241_v1 }
  0x51   :  { %vm1278_vm4 = vcmp.eq.s32.totalorder %v2610_v7, %v2677_v18  ;;  %vm1279_vm7 = vcmp.eq.s32.totalorder %v2625_v25, %v2677_v18  ;;  %v1540_v9 = vsel %vm925_vm2, 1.0, %v2241_v1  ;;  %vm754_vm9 = vcmp.eq.s32.totalorder %v2379_v37, %v2639_v41 }
  0x52   :  { %2033 = vxpose.xlu0.b32.cont [13/16] (narrow) %v2032_v15, 8  ;;  %v2675_v15 = vld [vmem:[#allocation2 + $0x6] ss:$0 sm:$0xff]  ;;  %v2735_v59 = vsel %vm1278_vm4, 1.0, %v2241_v1  ;;  %v2749_v0 = vsel %vm1279_vm7, 1.0, %v2241_v1  ;;  %vm926_vm10 = vcmp.eq.s32.totalorder %v2379_v37, %v2641_v42  ;;  %v1524_v29 = vsel %vm754_vm9, 1.0, %v2241_v1 }
  0x53   :  { %vm1092_vm6 = vcmp.eq.s32.totalorder %v2270_v2, %v2675_v15  ;;  %vm1093_vm12 = vcmp.eq.s32.totalorder %v2273_v3, %v2675_v15  ;;  %vm1094_vm15 = vcmp.eq.s32.totalorder %v2276_v4, %v2675_v15  ;;  %vm1106_vm3 = vcmp.eq.s32.totalorder %v2610_v7, %v2675_v15 }
  0x54   :  { %2068 = vxpose.xlu1.b32.cont [12/16] (narrow) %v2067_v38, 8  ;;  %v1552_v2 = vsel %vm1092_vm6, 1.0, %v2241_v1  ;;  %v1521_v38 = vsel %vm751_vm8, 1.0, %v2241_v1  ;;  %v1553_v3 = vsel %vm1093_vm12, 1.0, %v2241_v1  ;;  %v2728_v4 = vsel %vm1106_vm3, 1.0, %v2241_v1 }
  0x55   :  { %v2119_v5 = vpack.i.bf16 %v1569_v35, %v1552_v2  ;;  %v2121_v53 = vpack.i.bf16 %v1570_v6, %v1553_v3  ;;  %vm1095_vm5 = vcmp.eq.s32.totalorder %v2299_v12, %v2675_v15  ;;  %vm1107_vm6 = vcmp.eq.s32.totalorder %v2625_v25, %v2675_v15 }
  0x56   :  { %2035 = vxpose.xlu0.b32.cont [14/16] (narrow) %v2034_v34, 8  ;;  %v2075_v34 = vpack.i.bf16 %v1516_v21, %v1499_v20  ;;  %vm1267_vm8 = vcmp.eq.s32.totalorder %v2299_v12, %v2677_v18  ;;  %v2746_v61 = vsel %vm1107_vm6, 1.0, %v2241_v1  ;;  %v1555_v20 = vsel %vm1095_vm5, 1.0, %v2241_v1 }
  0x57   :  { %v2149_v11 = vpack.i.bf16 %v2749_v0, %v2746_v61  ;;  %v1572_v21 = vsel %vm1267_vm8, 1.0, %v2241_v1  ;;  %vm1268_vm12 = vcmp.eq.s32.totalorder %v2319_v19, %v2677_v18  ;;  %v1541_v30 = vsel %vm926_vm10, 1.0, %v2241_v1  ;;  %v2169_v61 = vld [vmem:[#allocation5 + $0x10] sm:$0xff] }
  0x58   :  { %2070 = vxpose.xlu1.b32.cont [13/16] (narrow) %v2069_v50, 8  ;;  %v2088_v50 = vpack.i.bf16 %v1538_v44, %v1521_v38  ;;  %vm755_vm13 = vcmp.eq.s32.totalorder %v2414_v46, %v2639_v41  ;;  %v2125_v12 = vpack.i.bf16 %v1572_v21, %v1555_v20  ;;  %v1573_v2 = vsel %vm1268_vm12, 1.0, %v2241_v1 }
  0x59   :  { %v2094_v35 = vpack.i.bf16 %v1541_v30, %v1524_v29  ;;  %vm1097_vm0 = vcmp.eq.s32.totalorder %v2335_v26, %v2675_v15  ;;  %vm756_vm2 = vcmp.eq.s32.totalorder %v2443_v54, %v2639_v41  ;;  %vm928_vm3 = vcmp.eq.s32.totalorder %v2443_v54, %v2641_v42 }
  0x5a   :  { %2037 = vxpose.xlu0.b32.cont [15/16] (narrow) %v2036_v49, 8  ;;  %v1539_v49 = vsel %vm924_vm11, 1.0, %v2241_v1  ;;  %vm1096_vm11 = vcmp.eq.s32.totalorder %v2319_v19, %v2675_v15  ;;  %v1525_v19 = vsel %vm755_vm13, 1.0, %v2241_v1  ;;  %v1557_v44 = vsel %vm1097_vm0, 1.0, %v2241_v1 }
  0x5b   :  { %v2090_v52 = vpack.i.bf16 %v1539_v49, %v1522_v48  ;;  %vm1098_vm4 = vcmp.eq.s32.totalorder %v2379_v37, %v2675_v15  ;;  %vm1270_vm5 = vcmp.eq.s32.totalorder %v2379_v37, %v2677_v18  ;;  %vm757_vm6 = vcmp.eq.s32.totalorder %v2474_v63, %v2639_v41 }
  0x5c   :  { %2072 = vxpose.xlu1.b32.cont [14/16] (narrow) %v2071_v60, 8  ;;  %v2147_v60 = vpack.i.bf16 %v2735_v59, %v2728_v4  ;;  %vm929_vm7 = vcmp.eq.s32.totalorder %v2474_v63, %v2641_v42  ;;  %v1558_v6 = vsel %vm1098_vm4, 1.0, %v2241_v1  ;;  %vm1099_vm8 = vcmp.eq.s32.totalorder %v2414_v46, %v2675_v15  ;;  %v2996_v4 = vld [vmem:[#allocation5 + $0x48] sm:$0xff] }
  0x5d   :  { %vm1271_vm9 = vcmp.eq.s32.totalorder %v2414_v46, %v2677_v18  ;;  %v1527_v37 = vsel %vm757_vm6, 1.0, %v2241_v1  ;;  %vm758_vm10 = vcmp.eq.s32.totalorder %v2503_v17, %v2639_v41  ;;  %vm1100_vm12 = vcmp.eq.s32.totalorder %v2443_v54, %v2675_v15 }
  0x5e   :  { %2039 = vxpose.xlu0.b32.end [16/16] (narrow) %v2038_v57, 8  ;;  %v1554_v57 = vsel %vm1094_vm15, 1.0, %v2241_v1  ;;  %vm927_vm15 = vcmp.eq.s32.totalorder %v2414_v46, %v2641_v42  ;;  %vm1272_vm13 = vcmp.eq.s32.totalorder %v2443_v54, %v2677_v18  ;;  %v1528_v46 = vsel %vm758_vm10, 1.0, %v2241_v1 }
  0x5f   :  { %vm931_vm0 = vcmp.eq.s32.totalorder %v2534_v32, %v2641_v42  ;;  %v1560_v21 = vsel %vm1100_vm12, 1.0, %v2241_v1  ;;  %vm932_vm4 = vcmp.eq.s32.totalorder %v2563_v43, %v2641_v42  ;;  %vm1274_vm6 = vcmp.eq.s32.totalorder %v2503_v17, %v2677_v18 }
  0x60   :  { %2074 = vxpose.xlu1.b32.cont [15/16] (narrow) %v2073_v24, 8  ;;  %v2123_v24 = vpack.i.bf16 %v1571_v58, %v1554_v57  ;;  %v1559_v58 = vsel %vm1099_vm8, 1.0, %v2241_v1  ;;  %v1546_v30 = vsel %vm931_vm0, 1.0, %v2241_v1  ;;  %vm933_vm8 = vcmp.eq.s32.totalorder %v2592_v55, %v2641_v42 }
  0x61   :  { %vm1275_vm10 = vcmp.eq.s32.totalorder %v2534_v32, %v2677_v18  ;;  %vm934_vm12 = vcmp.eq.s32.totalorder %v2610_v7, %v2641_v42  ;;  %vm763_vm0 = vcmp.eq.s32.totalorder %v2625_v25, %v2639_v41 }
  0x62   :  { %2083 = vxpose.xlu0.b32.start [1/16] (narrow) %v2082_v8, 8  ;;  %v1523_v8 = vsel %vm753_vm1, 1.0, %v2241_v1  ;;  %vm1269_vm1 = vcmp.eq.s32.totalorder %v2335_v26, %v2677_v18  ;;  %v1526_v26 = vsel %vm756_vm2, 1.0, %v2241_v1  ;;  %vm1273_vm2 = vcmp.eq.s32.totalorder %v2474_v63, %v2677_v18 }
  0x63   :  { %v1574_v48 = vsel %vm1269_vm1, 1.0, %v2241_v1  ;;  %vm1101_vm1 = vcmp.eq.s32.totalorder %v2474_v63, %v2675_v15 }
  0x64   :  { %2076 = vxpose.xlu1.b32.end [16/16] (narrow) %v2075_v34, 8  ;;  %v1556_v34 = vsel %vm1096_vm11, 1.0, %v2241_v1  ;;  %v2129_v3 = vpack.i.bf16 %v1574_v48, %v1557_v44  ;;  %vm930_vm11 = vcmp.eq.s32.totalorder %v2503_v17, %v2641_v42  ;;  %v1579_v44 = vsel %vm1274_vm6, 1.0, %v2241_v1 }
  0x65   :  { %v2127_v38 = vpack.i.bf16 %v1573_v2, %v1556_v34  ;;  %v1561_v34 = vsel %vm1101_vm1, 1.0, %v2241_v1  ;;  %v1578_v2 = vsel %vm1273_vm2, 1.0, %v2241_v1  ;;  %vm935_vm1 = vcmp.eq.s32.totalorder %v2625_v25, %v2641_v42 }
  0x66   :  { %2085 = vxpose.xlu0.b32.cont [2/16] (narrow) %v2084_v28, 8  ;;  %v2092_v28 = vpack.i.bf16 %v1540_v9, %v1523_v8  ;;  %v1576_v8 = vsel %vm1271_vm9, 1.0, %v2241_v1  ;;  %vm1103_vm9 = vcmp.eq.s32.totalorder %v2534_v32, %v2675_v15  ;;  %vm1105_vm2 = vcmp.eq.s32.totalorder %v2592_v55, %v2675_v15 }
  0x67   :  { %v2133_v20 = vpack.i.bf16 %v1576_v8, %v1559_v58  ;;  %v1565_v42 = vsel %vm1105_vm2, 1.0, %v2241_v1 }
  0x68   :  { %2120 = vxpose.xlu1.b32.start [1/16] (narrow) %v2119_v5, 8  ;;  %v1543_v5 = vsel %vm928_vm3, 1.0, %v2241_v1  ;;  %vm760_vm3 = vcmp.eq.s32.totalorder %v2563_v43, %v2639_v41 }
  0x69   :  { %v1530_v63 = vsel %vm760_vm3, 1.0, %v2241_v1  ;;  %vm1277_vm3 = vcmp.eq.s32.totalorder %v2592_v55, %v2677_v18 }
  0x6a   :  { %2087 = vxpose.xlu0.b32.cont [3/16] (narrow) %v2086_v36, 8  ;;  %v1542_v36 = vsel %vm927_vm15, 1.0, %v2241_v1  ;;  %vm759_vm15 = vcmp.eq.s32.totalorder %v2534_v32, %v2639_v41 }
  0x6b   :  { %v2096_v49 = vpack.i.bf16 %v1542_v36, %v1525_v19  ;;  %v1529_v54 = vsel %vm759_vm15, 1.0, %v2241_v1  ;;  %v1547_v19 = vsel %vm932_vm4, 1.0, %v2241_v1  ;;  %v2137_v36 = vpack.i.bf16 %v1578_v2, %v1561_v34 }
  0x6c   :  { %2122 = vxpose.xlu1.b32.cont [2/16] (narrow) %v2121_v53, 8  ;;  %v1544_v53 = vsel %vm929_vm7, 1.0, %v2241_v1  ;;  %vm761_vm7 = vcmp.eq.s32.totalorder %v2592_v55, %v2639_v41  ;;  %v2106_v48 = vpack.i.bf16 %v1547_v19, %v1530_v63  ;;  %vm1276_vm15 = vcmp.eq.s32.totalorder %v2563_v43, %v2677_v18  ;;  %v2984_v55 = vld [vmem:[#allocation5 + $0x58] sm:$0xff]  ;;  %v2990_v18 = vld [vmem:[#allocation5 + $0x50] sm:$0xff] }
  0x6d   :  { %v2100_v9 = vpack.i.bf16 %v1544_v53, %v1527_v37  ;;  %v1581_v37 = vsel %vm1276_vm15, 1.0, %v2241_v1 }
  0x6e   :  { %2089 = vxpose.xlu0.b32.cont [4/16] (narrow) %v2088_v50, 8  ;;  %v1575_v50 = vsel %vm1270_vm5, 1.0, %v2241_v1  ;;  %vm1102_vm5 = vcmp.eq.s32.totalorder %v2503_v17, %v2675_v15  ;;  %v1531_v17 = vsel %vm761_vm7, 1.0, %v2241_v1 }
  0x6f   :  { %v2131_v57 = vpack.i.bf16 %v1575_v50, %v1558_v6  ;;  %v1549_v50 = vsel %vm934_vm12, 1.0, %v2241_v1 }
  0x70   :  { %2124 = vxpose.xlu1.b32.cont [3/16] (narrow) %v2123_v24, 8  ;;  %v1545_v24 = vsel %vm930_vm11, 1.0, %v2241_v1  ;;  %vm762_vm11 = vcmp.eq.s32.totalorder %v2610_v7, %v2639_v41  ;;  %v1550_v41 = vsel %vm935_vm1, 1.0, %v2241_v1 }
  0x71   :  { %v2102_v29 = vpack.i.bf16 %v1545_v24, %v1528_v46  ;;  %v1532_v32 = vsel %vm762_vm11, 1.0, %v2241_v1  ;;  %v2170_v24 = vld [vmem:[#allocation5 + $0x8] sm:$0xff] }
  0x72   :  { %2091 = vxpose.xlu0.b32.cont [5/16] (narrow) %v2090_v52, 8  ;;  %v2098_v52 = vpack.i.bf16 %v1543_v5, %v1526_v26  ;;  %v1563_v5 = vsel %vm1103_vm9, 1.0, %v2241_v1  ;;  %v2110_v53 = vpack.i.bf16 %v1549_v50, %v1532_v32 }
  0x74   :  { %2126 = vxpose.xlu1.b32.cont [4/16] (narrow) %v2125_v12, 8 }
  0x76   :  { %2093 = vxpose.xlu0.b32.cont [6/16] (narrow) %v2092_v28, 8  ;;  %v1577_v28 = vsel %vm1272_vm13, 1.0, %v2241_v1  ;;  %vm1104_vm13 = vcmp.eq.s32.totalorder %v2563_v43, %v2675_v15  ;;  %v1533_v43 = vsel %vm763_vm0, 1.0, %v2241_v1 }
  0x77   :  { %v2135_v12 = vpack.i.bf16 %v1577_v28, %v1560_v21  ;;  %v2112_v58 = vpack.i.bf16 %v1550_v41, %v1533_v43 }
  0x78   :  { %2128 = vxpose.xlu1.b32.cont [5/16] (narrow) %v2127_v38, 8  ;;  %v1562_v38 = vsel %vm1102_vm5, 1.0, %v2241_v1 }
  0x79   :  { %v2139_v26 = vpack.i.bf16 %v1579_v44, %v1562_v38 }
  0x7a   :  { %2095 = vxpose.xlu0.b32.cont [7/16] (narrow) %v2094_v35, 8  ;;  %v2104_v35 = vpack.i.bf16 %v1546_v30, %v1529_v54 }
  0x7c   :  { %2130 = vxpose.xlu1.b32.cont [6/16] (narrow) %v2129_v3, 8  ;;  %v1580_v3 = vsel %vm1275_vm10, 1.0, %v2241_v1 }
  0x7d   :  { %v2141_v7 = vpack.i.bf16 %v1580_v3, %v1563_v5 }
  0x7e   :  { %2097 = vxpose.xlu0.b32.cont [8/16] (narrow) %v2096_v49, 8  ;;  %v1548_v49 = vsel %vm933_vm8, 1.0, %v2241_v1 }
  0x7f   :  { %v2108_v6 = vpack.i.bf16 %v1548_v49, %v1531_v17 }
  0x80   :  { %2132 = vxpose.xlu1.b32.cont [7/16] (narrow) %v2131_v57, 8  ;;  %v1582_v57 = vsel %vm1277_vm3, 1.0, %v2241_v1 }
  0x81   :  { %v2145_v8 = vpack.i.bf16 %v1582_v57, %v1565_v42 }
  0x82   :  { %2099 = vxpose.xlu0.b32.cont [9/16] (narrow) %v2098_v52, 8  ;;  %v1564_v52 = vsel %vm1104_vm13, 1.0, %v2241_v1 }
  0x83   :  { %v2143_v25 = vpack.i.bf16 %v1581_v37, %v1564_v52 }
  0x84   :  { %2134 = vxpose.xlu1.b32.cont [8/16] (narrow) %v2133_v20, 8 }
  0x86   :  { %2101 = vxpose.xlu0.b32.cont [10/16] (narrow) %v2100_v9, 8 }
  0x88   :  { %2136 = vxpose.xlu1.b32.cont [9/16] (narrow) %v2135_v12, 8 }
  0x8a   :  { %2103 = vxpose.xlu0.b32.cont [11/16] (narrow) %v2102_v29, 8 }
  0x8c   :  { %2138 = vxpose.xlu1.b32.cont [10/16] (narrow) %v2137_v36, 8 }
  0x8e   :  { %2105 = vxpose.xlu0.b32.cont [12/16] (narrow) %v2104_v35, 8 }
  0x90   :  { %2140 = vxpose.xlu1.b32.cont [11/16] (narrow) %v2139_v26, 8 }
  0x92   :  { %2107 = vxpose.xlu0.b32.cont [13/16] (narrow) %v2106_v48, 8 }
  0x94   :  { %2142 = vxpose.xlu1.b32.cont [12/16] (narrow) %v2141_v7, 8 }
  0x96   :  { %2109 = vxpose.xlu0.b32.cont [14/16] (narrow) %v2108_v6, 8 }
  0x98   :  { %2144 = vxpose.xlu1.b32.cont [13/16] (narrow) %v2143_v25, 8 }
  0x9a   :  { %2111 = vxpose.xlu0.b32.cont [15/16] (narrow) %v2110_v53, 8 }
  0x9c   :  { %2146 = vxpose.xlu1.b32.cont [14/16] (narrow) %v2145_v8, 8 }
  0x9e   :  { %2113 = vxpose.xlu0.b32.end [16/16] (narrow) %v2112_v58, 8  ;;  %v2040_v9 = vpop.trf.xlu0 }
  0x9f   :  { %v2041_v15 = vunpack.i.l.bf16 %v2040_v9  ;;  %v2044_v46 = vunpack.i.h.bf16 %v2040_v9 }
  0xa0   :  { %2148 = vxpose.xlu1.b32.cont [15/16] (narrow) %v2147_v60, 8  ;;  %v2168_v60 = vld [vmem:[#allocation5 + $0x18] sm:$0xff] }
  0xa1   :  { %1754 = vmatmul.mubr.f32.vlgmr.msra.gmra.mxu0 %v2041_v15  ;;  %1789 = vmatmul.mubr.f32.vlgmr.msra.gmra.mxu1 %v2044_v46 }
  0xa2   :  { %1792 = vmatpush3.msra.mxu0 %v2301_v13  ;;  %1827 = vmatpush3.msra.mxu1 %v2301_v13 }
  0xa3   :  { %1793 = vmatprep.subr.mxu0 %v2241_v1  ;;  %1828 = vmatprep.subr.mxu1 %v2241_v1 }
  0xa4   :  { %1794 = vmatpush3.msra.mxu0 %v2303_v14  ;;  %1829 = vmatpush3.msra.mxu1 %v2303_v14  ;;  %v2077_v13 = vpop.trf.xlu1 }
  0xa5   :  { %1795 = vmatprep.subr.mxu0 %v2241_v1  ;;  %1830 = vmatprep.subr.mxu1 %v2241_v1  ;;  %v2081_v14 = vunpack.i.h.bf16 %v2077_v13 }
  0xa6   :  { %1796 = vmatpush3.msra.mxu0 %v2308_v16  ;;  %1831 = vmatpush3.msra.mxu1 %v2308_v16  ;;  %v2078_v16 = vunpack.i.l.bf16 %v2077_v13 }
  0xa7   :  { %1797 = vmatprep.subr.mxu0 %v2241_v1  ;;  %1832 = vmatprep.subr.mxu1 %v2241_v1 }
  0xa8   :  { %1798 = vmatpush3.msra.mxu0 %v2329_v22  ;;  %1833 = vmatpush3.msra.mxu1 %v2329_v22  ;;  %v2960_v22 = vld [vmem:[#allocation5 + $0x78] sm:$0xff] }
  0xa9   :  { %1799 = vmatprep.subr.mxu0 %v2241_v1  ;;  %1834 = vmatprep.subr.mxu1 %v2241_v1 }
  0xaa   :  { %1800 = vmatpush3.msra.mxu0 %v2341_v27  ;;  %1835 = vmatpush3.msra.mxu1 %v2341_v27  ;;  %v2966_v27 = vld [vmem:[#allocation5 + $0x70] sm:$0xff] }
  0xab   :  { %1801 = vmatprep.subr.mxu0 %v2241_v1  ;;  %1836 = vmatprep.subr.mxu1 %v2241_v1 }
  0xac   :  { %1802 = vmatpush3.msra.mxu0 %v2361_v33  ;;  %1837 = vmatpush3.msra.mxu1 %v2361_v33  ;;  %v2972_v33 = vld [vmem:[#allocation5 + $0x68] sm:$0xff] }
  0xad   :  { %1803 = vmatprep.subr.mxu0 %v2241_v1  ;;  %1838 = vmatprep.subr.mxu1 %v2241_v1 }
  0xae   :  { %1804 = vmatpush3.msra.mxu0 %v2384_v39  ;;  %1839 = vmatpush3.msra.mxu1 %v2384_v39  ;;  %v2978_v39 = vld [vmem:[#allocation5 + $0x60] sm:$0xff] }
  0xaf   :  { %1805 = vmatprep.subr.mxu0 %v2241_v1  ;;  %1840 = vmatprep.subr.mxu1 %v2241_v1 }
  0xb0   :  { %1806 = vmatpush3.msra.mxu0 %v2407_v45  ;;  %1841 = vmatpush3.msra.mxu1 %v2407_v45 }
  0xb1   :  { %1807 = vmatprep.subr.mxu0 %v2241_v1  ;;  %1842 = vmatprep.subr.mxu1 %v2241_v1 }
  0xb2   :  { %1808 = vmatpush3.msra.mxu0 %v2426_v51  ;;  %1843 = vmatpush3.msra.mxu1 %v2426_v51 }
  0xb3   :  { %1809 = vmatprep.subr.mxu0 %v2241_v1  ;;  %1844 = vmatprep.subr.mxu1 %v2241_v1 }
  0xb4   :  { %1810 = vmatpush3.msra.mxu0 %v2446_v56  ;;  %1845 = vmatpush3.msra.mxu1 %v2446_v56 }
  0xb5   :  { %1811 = vmatprep.subr.mxu0 %v2241_v1  ;;  %1846 = vmatprep.subr.mxu1 %v2241_v1 }
  0xb6   :  { %1812 = vmatpush3.msra.mxu0 %v2467_v62  ;;  %1847 = vmatpush3.msra.mxu1 %v2467_v62 }
  0xb7   :  { %1813 = vmatprep.subr.mxu0 %v2241_v1  ;;  %1848 = vmatprep.subr.mxu1 %v2241_v1 }
  0xb8   :  { %1814 = vmatpush3.msra.mxu0 %v2486_v10  ;;  %1849 = vmatpush3.msra.mxu1 %v2486_v10 }
  0xb9   :  { %1815 = vmatprep.subr.mxu0 %v2241_v1  ;;  %1850 = vmatprep.subr.mxu1 %v2241_v1 }
  0xba   :  { %1816 = vmatpush3.msra.mxu0 %v2506_v23  ;;  %1851 = vmatpush3.msra.mxu1 %v2506_v23 }
  0xbb   :  { %1817 = vmatprep.subr.mxu0 %v2241_v1  ;;  %1852 = vmatprep.subr.mxu1 %v2241_v1 }
  0xbc   :  { %1818 = vmatpush3.msra.mxu0 %v2527_v31  ;;  %1853 = vmatpush3.msra.mxu1 %v2527_v31 }
  0xbd   :  { %1819 = vmatprep.subr.mxu0 %v2241_v1  ;;  %1854 = vmatprep.subr.mxu1 %v2241_v1 }
  0xbe   :  { %2150 = vxpose.xlu1.b32.end [16/16] (narrow) %v2149_v11, 8  ;;  %1820 = vmatpush3.msra.mxu0 %v2546_v40 }
  0xbf   :  { %1855 = vmatpush3.msra.mxu1 %v2546_v40  ;;  %1821 = vmatprep.subr.mxu0 %v2241_v1 }
  0xc0   :  { %1856 = vmatprep.subr.mxu1 %v2241_v1  ;;  %1822 = vmatpush3.msra.mxu0 %v2566_v47 }
  0xc1   :  { %1823 = vmatprep.mubr.msk.f32.mxu0 %vm2242_vm14, %v2241_v1  ;;  %1857 = vmatpush3.msra.mxu1 %v2566_v47 }
  0xc2   :  { %1858 = vmatprep.mubr.msk.f32.mxu1 %vm2242_vm14, %v2241_v1  ;;  %1824 = vmatmul.mubr.f32.vlgmr.msra.gmra.mxu0 %v2078_v16 }
  0xc3   :  { %1859 = vmatmul.mubr.f32.vlgmr.msra.gmra.mxu1 %v2081_v14  ;;  %1861 = vmatprep.subr.mxu0 %v2241_v1 }
  0xc4   :  { %1896 = vmatprep.subr.mxu1 %v2241_v1  ;;  %1862 = vmatpush3.msra.mxu0 %v2960_v22 }
  0xc5   :  { %1897 = vmatpush3.msra.mxu1 %v2960_v22  ;;  %1863 = vmatprep.subr.mxu0 %v2241_v1 }
  0xc6   :  { %1898 = vmatprep.subr.mxu1 %v2241_v1  ;;  %1864 = vmatpush3.msra.mxu0 %v2966_v27 }
  0xc7   :  { %1899 = vmatpush3.msra.mxu1 %v2966_v27  ;;  %1865 = vmatprep.subr.mxu0 %v2241_v1 }
  0xc8   :  { %1900 = vmatprep.subr.mxu1 %v2241_v1  ;;  %1866 = vmatpush3.msra.mxu0 %v2972_v33 }
  0xc9   :  { %1901 = vmatpush3.msra.mxu1 %v2972_v33  ;;  %1867 = vmatprep.subr.mxu0 %v2241_v1 }
  0xca   :  { %1902 = vmatprep.subr.mxu1 %v2241_v1  ;;  %1868 = vmatpush3.msra.mxu0 %v2978_v39 }
  0xcb   :  { %1903 = vmatpush3.msra.mxu1 %v2978_v39  ;;  %1869 = vmatprep.subr.mxu0 %v2241_v1 }
  0xcc   :  { %1904 = vmatprep.subr.mxu1 %v2241_v1  ;;  %1870 = vmatpush3.msra.mxu0 %v2984_v55 }
  0xcd   :  { %1905 = vmatpush3.msra.mxu1 %v2984_v55  ;;  %1871 = vmatprep.subr.mxu0 %v2241_v1 }
  0xce   :  { %1906 = vmatprep.subr.mxu1 %v2241_v1  ;;  %1872 = vmatpush3.msra.mxu0 %v2990_v18 }
  0xcf   :  { %1907 = vmatpush3.msra.mxu1 %v2990_v18  ;;  %1873 = vmatprep.subr.mxu0 %v2241_v1 }
  0xd0   :  { %1908 = vmatprep.subr.mxu1 %v2241_v1  ;;  %1874 = vmatpush3.msra.mxu0 %v2996_v4 }
  0xd1   :  { %1909 = vmatpush3.msra.mxu1 %v2996_v4  ;;  %1875 = vmatprep.subr.mxu0 %v2241_v1 }
  0xd2   :  { %1910 = vmatprep.subr.mxu1 %v2241_v1  ;;  %1876 = vmatpush3.msra.mxu0 %v2407_v45 }
  0xd3   :  { %1911 = vmatpush3.msra.mxu1 %v2407_v45  ;;  %1877 = vmatprep.subr.mxu0 %v2241_v1 }
  0xd4   :  { %1912 = vmatprep.subr.mxu1 %v2241_v1  ;;  %1878 = vmatpush3.msra.mxu0 %v2426_v51 }
  0xd5   :  { %1913 = vmatpush3.msra.mxu1 %v2426_v51  ;;  %1879 = vmatprep.subr.mxu0 %v2241_v1 }
  0xd6   :  { %1914 = vmatprep.subr.mxu1 %v2241_v1  ;;  %1880 = vmatpush3.msra.mxu0 %v2446_v56 }
  0xd7   :  { %1915 = vmatpush3.msra.mxu1 %v2446_v56  ;;  %1881 = vmatprep.subr.mxu0 %v2241_v1 }
  0xd8   :  { %1916 = vmatprep.subr.mxu1 %v2241_v1  ;;  %1882 = vmatpush3.msra.mxu0 %v2467_v62 }
  0xd9   :  { %1917 = vmatpush3.msra.mxu1 %v2467_v62  ;;  %1883 = vmatprep.subr.mxu0 %v2241_v1  ;;  %v2163_v62 = vld [vmem:[#allocation5 + $0x40] sm:$0xff] }
  0xda   :  { %1918 = vmatprep.subr.mxu1 %v2241_v1  ;;  %1884 = vmatpush3.msra.mxu0 %v2486_v10 }
  0xdb   :  { %1919 = vmatpush3.msra.mxu1 %v2486_v10  ;;  %1885 = vmatprep.subr.mxu0 %v2241_v1  ;;  %v2164_v10 = vld [vmem:[#allocation5 + $0x38] sm:$0xff] }
  0xdc   :  { %1920 = vmatprep.subr.mxu1 %v2241_v1  ;;  %1886 = vmatpush3.msra.mxu0 %v2506_v23 }
  0xdd   :  { %1921 = vmatpush3.msra.mxu1 %v2506_v23  ;;  %1887 = vmatprep.subr.mxu0 %v2241_v1  ;;  %v2165_v23 = vld [vmem:[#allocation5 + $0x30] sm:$0xff] }
  0xde   :  { %1922 = vmatprep.subr.mxu1 %v2241_v1  ;;  %v2114_v45 = vpop.trf.xlu0  ;;  %1888 = vmatpush3.msra.mxu0 %v2527_v31 }
  0xdf   :  { %1923 = vmatpush3.msra.mxu1 %v2527_v31  ;;  %1889 = vmatprep.subr.mxu0 %v2241_v1  ;;  %v2118_v51 = vunpack.i.h.bf16 %v2114_v45  ;;  %v2115_v56 = vunpack.i.l.bf16 %v2114_v45  ;;  %v2166_v31 = vld [vmem:[#allocation5 + $0x28] sm:$0xff] }
  0xe0   :  { %1924 = vmatprep.subr.mxu1 %v2241_v1  ;;  %1890 = vmatpush3.msra.mxu0 %v2546_v40 }
  0xe1   :  { %1925 = vmatpush3.msra.mxu1 %v2546_v40  ;;  %1891 = vmatprep.subr.mxu0 %v2241_v1  ;;  %v2167_v40 = vld [vmem:[#allocation5 + $0x20] sm:$0xff] }
  0xe2   :  { %1926 = vmatprep.subr.mxu1 %v2241_v1  ;;  %1892 = vmatpush3.msra.mxu0 %v2566_v47 }
  0xe3   :  { %1927 = vmatpush3.msra.mxu1 %v2566_v47  ;;  %1893 = vmatprep.mubr.msk.f32.mxu0 %vm2242_vm14, %v2241_v1 }
  0xe4   :  { %1928 = vmatprep.mubr.msk.f32.mxu1 %vm2242_vm14, %v2241_v1  ;;  %1931 = vmatprep.subr.mxu0 %v2241_v1 }
  0xe5   :  { %1966 = vmatprep.subr.mxu1 %v2241_v1  ;;  %1894 = vmatmul.mubr.f32.vlgmr.msra.gmra.mxu0 %v2115_v56 }
  0xe6   :  { %1929 = vmatmul.mubr.f32.vlgmr.msra.gmra.mxu1 %v2118_v51  ;;  %1932 = vmatpush3.msra.mxu0 %v2960_v22 }
  0xe7   :  { %1967 = vmatpush3.msra.mxu1 %v2960_v22  ;;  %1933 = vmatprep.subr.mxu0 %v2241_v1 }
  0xe8   :  { %1968 = vmatprep.subr.mxu1 %v2241_v1  ;;  %1934 = vmatpush3.msra.mxu0 %v2966_v27 }
  0xe9   :  { %1969 = vmatpush3.msra.mxu1 %v2966_v27  ;;  %1935 = vmatprep.subr.mxu0 %v2241_v1 }
  0xea   :  { %1970 = vmatprep.subr.mxu1 %v2241_v1  ;;  %1936 = vmatpush3.msra.mxu0 %v2972_v33 }
  0xeb   :  { %1971 = vmatpush3.msra.mxu1 %v2972_v33  ;;  %1937 = vmatprep.subr.mxu0 %v2241_v1 }
  0xec   :  { %1972 = vmatprep.subr.mxu1 %v2241_v1  ;;  %1938 = vmatpush3.msra.mxu0 %v2978_v39 }
  0xed   :  { %1973 = vmatpush3.msra.mxu1 %v2978_v39  ;;  %1939 = vmatprep.subr.mxu0 %v2241_v1 }
  0xee   :  { %1974 = vmatprep.subr.mxu1 %v2241_v1  ;;  %1940 = vmatpush3.msra.mxu0 %v2984_v55 }
  0xef   :  { %1975 = vmatpush3.msra.mxu1 %v2984_v55  ;;  %1941 = vmatprep.subr.mxu0 %v2241_v1 }
  0xf0   :  { %1976 = vmatprep.subr.mxu1 %v2241_v1  ;;  %1942 = vmatpush3.msra.mxu0 %v2990_v18 }
  0xf1   :  { %1977 = vmatpush3.msra.mxu1 %v2990_v18  ;;  %1943 = vmatprep.subr.mxu0 %v2241_v1 }
  0xf2   :  { %1978 = vmatprep.subr.mxu1 %v2241_v1  ;;  %1944 = vmatpush3.msra.mxu0 %v2996_v4 }
  0xf3   :  { %1979 = vmatpush3.msra.mxu1 %v2996_v4  ;;  %1945 = vmatprep.subr.mxu0 %v2241_v1 }
  0xf4   :  { %1980 = vmatprep.subr.mxu1 %v2241_v1  ;;  %1946 = vmatpush3.msra.mxu0 %v2163_v62 }
  0xf5   :  { %1981 = vmatpush3.msra.mxu1 %v2163_v62  ;;  %1947 = vmatprep.subr.mxu0 %v2241_v1 }
  0xf6   :  { %1982 = vmatprep.subr.mxu1 %v2241_v1  ;;  %1948 = vmatpush3.msra.mxu0 %v2164_v10 }
  0xf7   :  { %1983 = vmatpush3.msra.mxu1 %v2164_v10  ;;  %1949 = vmatprep.subr.mxu0 %v2241_v1 }
  0xf8   :  { %1984 = vmatprep.subr.mxu1 %v2241_v1  ;;  %1950 = vmatpush3.msra.mxu0 %v2165_v23 }
  0xf9   :  { %1985 = vmatpush3.msra.mxu1 %v2165_v23  ;;  %1951 = vmatprep.subr.mxu0 %v2241_v1 }
  0xfa   :  { %1986 = vmatprep.subr.mxu1 %v2241_v1  ;;  %1952 = vmatpush3.msra.mxu0 %v2166_v31 }
  0xfb   :  { %1987 = vmatpush3.msra.mxu1 %v2166_v31  ;;  %1953 = vmatprep.subr.mxu0 %v2241_v1 }
  0xfc   :  { %1988 = vmatprep.subr.mxu1 %v2241_v1  ;;  %1954 = vmatpush3.msra.mxu0 %v2167_v40 }
  0xfd   :  { %1989 = vmatpush3.msra.mxu1 %v2167_v40  ;;  %1955 = vmatprep.subr.mxu0 %v2241_v1 }
  0xfe   :  { %1990 = vmatprep.subr.mxu1 %v2241_v1  ;;  %v2151_v59 = vpop.trf.xlu1  ;;  %1956 = vmatpush3.msra.mxu0 %v2168_v60 }
  0xff   :  { %1991 = vmatpush3.msra.mxu1 %v2168_v60  ;;  %1957 = vmatprep.subr.mxu0 %v2241_v1  ;;  %v2155_v0 = vunpack.i.h.bf16 %v2151_v59  ;;  %v2152_v11 = vunpack.i.l.bf16 %v2151_v59 }
 0x100   :  { %1992 = vmatprep.subr.mxu1 %v2241_v1  ;;  %1958 = vmatpush3.msra.mxu0 %v2169_v61 }
 0x101   :  { %1993 = vmatpush3.msra.mxu1 %v2169_v61  ;;  %1959 = vmatprep.subr.mxu0 %v2241_v1 }
 0x102   :  { %1994 = vmatprep.subr.mxu1 %v2241_v1  ;;  %1960 = vmatpush3.msra.mxu0 %v2170_v24 }
 0x103   :  { %1995 = vmatpush3.msra.mxu1 %v2170_v24  ;;  %1961 = vmatprep.subr.mxu0 %v2241_v1 }
 0x104   :  { %1996 = vmatprep.subr.mxu1 %v2241_v1  ;;  %1962 = vmatpush3.msra.mxu0 %v2566_v47 }
 0x105   :  { %1963 = vmatprep.mubr.msk.f32.mxu0 %vm2242_vm14, %v2241_v1  ;;  %1997 = vmatpush3.msra.mxu1 %v2566_v47 }
 0x106   :  { %1998 = vmatprep.mubr.msk.f32.mxu1 %vm2242_vm14, %v2241_v1  ;;  %1964 = vmatmul.mubr.f32.vlgmr.msra.gmra.mxu0 %v2152_v11 }
 0x107   :  { %1999 = vmatmul.mubr.f32.vlgmr.msra.gmra.mxu1 %v2155_v0 }
 0x161   :  { %v222_v20 = vpop.f32.mrf.mxu0  ;;  %v394_v21 = vpop.f32.mrf.mxu1 }
 0x162   :  { %226 = vst [vmem:[#allocation7] sm:$0xff] %v222_v20  ;;  %398 = vst [vmem:[#allocation7 + $0x8] sm:$0xff] %v394_v21 }
 0x163   :  { %v1755_v28 = vpop.f32.mrf.mxu0  ;;  %v1790_v29 = vpop.f32.mrf.mxu1 }
 0x182   :  { %v566_v54 = vpop.f32.mrf.mxu0 }
 0x183   :  { %v738_v30 = vpop.f32.mrf.mxu1  ;;  %570 = vst [vmem:[#allocation7 + $0x10] sm:$0xff] %v566_v54 }
 0x184   :  { %742 = vst [vmem:[#allocation7 + $0x18] sm:$0xff] %v738_v30  ;;  %v1825_v12 = vpop.f32.mrf.mxu0 }
 0x185   :  { %v1860_v34 = vpop.f32.mrf.mxu1 }
 0x1a5   :  { %v910_v2 = vpop.f32.mrf.mxu0 }
 0x1a6   :  { %v1082_v35 = vpop.f32.mrf.mxu1  ;;  %914 = vst [vmem:[#allocation7 + $0x20] sm:$0xff] %v910_v2 }
 0x1a7   :  { %1086 = vst [vmem:[#allocation7 + $0x28] sm:$0xff] %v1082_v35  ;;  %v1895_v47 = vpop.f32.mrf.mxu0 }
 0x1a8   :  { %v1930_v1 = vpop.f32.mrf.mxu1 }
 0x1c6   :  { %v1254_v63 = vpop.f32.mrf.mxu0 }
 0x1c7   :  { %v1426_v19 = vpop.f32.mrf.mxu1  ;;  %1258 = vst [vmem:[#allocation7 + $0x30] sm:$0xff] %v1254_v63 }
 0x1c8   :  { %1430 = vst [vmem:[#allocation7 + $0x38] sm:$0xff] %v1426_v19  ;;  %v1965_v36 = vpop.f32.mrf.mxu0 }
 0x1c9   :  { %v2000_v38 = vpop.f32.mrf.mxu1 }
 0x1ca   :  { %2222 = shalt.err (!%p2219_p0)
}
 0x1cb   :  { %1442 = dma.vmem_to_hbm [thread:$0]  %s1437_s1, 1024, %s3100_s2, [#allocation4], %s2239_s17, %s2239_s17, %s2240_s18  }
 0x1cc   :  { %2235 = dma.done.wait [#allocation4], 1024  }
 0x1cd   :  { %2236 = vsyncadd [#allocation4], 4294966272 }
 0x1ce   :  { %1446 = vsyncpa [#allocation3], 1 }
 0x1cf   :  { %1447 = vsyncpa [#allocation6], 1 }
 0x1d0   :  { %1448 = vsyncpa [#allocation4], 1 }

</bundles_post_ra>
